<compile_context>
chip_gen: v7x
topology: tpu7x:2x2x1
jax: 0.10.0
libtpu: 0.0.40
codegen_flags: <defaults>
</compile_context>

<pallas_src>
import functools

import jax
import jax.numpy as jnp
from jax.experimental import pallas as pl
from jax.experimental.pallas import tpu as pltpu


_SLACK_BYTES = 4 << 20   # headroom for params / compiler-internal scratch


# ---------------------------------------------------------------------------
# Kernels
# ---------------------------------------------------------------------------

def _se_fused_kernel(x_ref, w1_ref, b1_ref, w2_ref, b2_ref, o_ref, *, inv_hw):
    """One batch tile: pool -> excite -> gate multiply, fully VMEM resident."""
    # Squeeze: f32-accumulated mean over the spatial (lane) axis.  Read the
    # block here and again for the multiply below rather than holding one
    # multi-MiB value live across the excite section (avoids a full-block
    # VMEM temporary / spill).
    avg = jnp.sum(x_ref[...], axis=-1, dtype=jnp.float32) * inv_hw       # (Bt, C)

    # Excitation: batched over the tile (M = Bt, not 1 per sample).
    h = jnp.dot(avg, w1_ref[...], preferred_element_type=jnp.float32) + b1_ref[...]
    h = jnp.maximum(h, 0.0)                                              # (Bt, hidden)
    z = jnp.dot(h, w2_ref[...], preferred_element_type=jnp.float32) + b2_ref[...]
    # Numerically-stable sigmoid via EUP tanh (no inf intermediate).
    gate = 0.5 * jnp.tanh(0.5 * z) + 0.5                                 # (Bt, C) f32

    # Scale: f32 per-vreg multiply (elementwise chain fuses per-vreg; the gate
    # is not quantized to the input dtype before use), cast back on store.
    o_ref[...] = (x_ref[...].astype(jnp.float32)
                  * gate[:, :, None]).astype(o_ref.dtype)


def _pool_kernel(x_ref, o_ref, *, inv_hw):
    """(Bt, Ct, HW) -> (Bt, Ct, 1) f32 spatial mean (two-pass fallback)."""
    o_ref[...] = (jnp.sum(x_ref[...], axis=-1, dtype=jnp.float32) * inv_hw)[:, :, None]


def _scale_kernel(x_ref, g_ref, o_ref):
    """Broadcast channel-gate multiply, f32 per-vreg, cast on store."""
    o_ref[...] = (x_ref[...].astype(jnp.float32) * g_ref[...]).astype(o_ref.dtype)


# ---------------------------------------------------------------------------
# Tiling / VMEM planning
# ---------------------------------------------------------------------------

def _vmem_plan():
    """(target_block_bytes, vmem_budget_bytes), gated on chip VMEM capacity."""
    try:
        cap = int(getattr(pltpu.get_tpu_info(), "vmem_capacity_bytes", 0) or 0)
    except Exception:
        cap = 0
    if cap >= (96 << 20):
        # 128 MiB VMEM parts (v5e / v6e): larger blocks amortize the
        # ~0.35 us/step grid overhead on this mem-bound kernel.
        return 8 << 20, 56 << 20
    # 64 MiB-per-TensorCore parts (v7x) or unknown: stay conservative so
    # 2x-in + 2x-out double buffering plus params/scratch keeps headroom.
    return 4 << 20, 36 << 20


def _batch_tile(B, row_bytes, params_bytes, target_bytes, budget):
    """Batch tile for the fused path: ~target-sized blocks, double-buffered
    in+out under the budget, and >= min(B, 4) grid steps so the batch axis can
    spread across both v7x TensorCores."""
    usable = max(budget - params_bytes - _SLACK_BYTES, 4 * row_bytes)
    bt = min(B,
             max(1, target_bytes // row_bytes),
             max(1, usable // (4 * row_bytes)))
    desired_steps = min(B, 4)
    bt = min(bt, max(1, B // desired_steps))
    return int(max(bt, 1))


# ---------------------------------------------------------------------------
# Fused single-pass path
# ---------------------------------------------------------------------------

def _se_fused(x, w1t, b1, w2t, b2, HW, target_bytes, budget):
    B, C, _ = x.shape
    hidden = w1t.shape[1]
    dtype = x.dtype
    itemsize = jnp.dtype(dtype).itemsize
    row_bytes = C * HW * itemsize
    params_bytes = sum(int(a.size) * jnp.dtype(a.dtype).itemsize
                       for a in (w1t, b1, w2t, b2))

    bt = _batch_tile(B, row_bytes, params_bytes, target_bytes, budget)
    block_bytes = bt * row_bytes
    vmem_limit = int(min(budget,
                         max(16 << 20,
                             4 * block_bytes + params_bytes + _SLACK_BYTES)))

    kernel = functools.partial(_se_fused_kernel, inv_hw=float(1.0 / HW))
    cost = pl.CostEstimate(
        flops=2 * B * C * HW + 4 * B * C * hidden,
        transcendentals=B * C,
        bytes_accessed=2 * B * C * HW * itemsize + params_bytes,
    )

    # Non-divisible B: cdiv grid.  The partial last block is safe because every
    # op (pool over HW, per-row matmul, elementwise gate) is batch-row
    # independent and out-of-bounds output rows are dropped on writeback.
    return pl.pallas_call(
        kernel,
        out_shape=jax.ShapeDtypeStruct((B, C, HW), dtype),
        grid=(pl.cdiv(B, bt),),
        in_specs=[
            pl.BlockSpec((bt, C, HW), lambda b: (b, 0, 0)),
            # Tiny params: constant block index -> DMA'd once, stay resident.
            pl.BlockSpec((C, hidden), lambda b: (0, 0)),
            pl.BlockSpec((1, hidden), lambda b: (0, 0)),
            pl.BlockSpec((hidden, C), lambda b: (0, 0)),
            pl.BlockSpec((1, C), lambda b: (0, 0)),
        ],
        out_specs=pl.BlockSpec((bt, C, HW), lambda b: (b, 0, 0)),
        compiler_params=pltpu.CompilerParams(
            dimension_semantics=("parallel",),
            vmem_limit_bytes=vmem_limit,
        ),
        cost_estimate=cost,
    )(x, w1t, b1, w2t, b2)


# ---------------------------------------------------------------------------
# Two-pass channel-tiled fallback (single (1, C, HW) row too big for VMEM)
# ---------------------------------------------------------------------------

def _se_two_pass(x, w1t, b1, w2t, b2, HW, target_bytes, budget):
    B, C, _ = x.shape
    dtype = x.dtype
    itemsize = jnp.dtype(dtype).itemsize
    plane_bytes = HW * itemsize            # one (1, 1, HW) channel row

    # Channel tile: a multiple of 8 (sublane) or the full C, sized so
    # double-buffered in+out blocks stay inside the budget.
    if C <= 8:
        ct = C
    else:
        ct = max(8, (target_bytes // max(plane_bytes, 1)) // 8 * 8)
        while ct > 8 and 4 * ct * plane_bytes + _SLACK_BYTES > budget:
            ct -= 8
        if ct >= C:
            ct = C
    # TODO(synk): if even a (1, 8, HW) block exceeds the budget (HW * itemsize
    # > ~1 MiB, e.g. 512x512 f32 maps) an HW-tiled accumulation pass is needed.

    bt = max(1, min(B,
                    max(1, target_bytes // max(ct * plane_bytes, 1)),
                    max(1, (budget - _SLACK_BYTES) // max(4 * ct * plane_bytes, 1))))

    block_bytes = bt * ct * plane_bytes
    vmem_limit = int(min(budget, max(16 << 20, 4 * block_bytes + _SLACK_BYTES)))
    grid = (pl.cdiv(B, bt), pl.cdiv(C, ct))
    sem = ("parallel", "parallel")

    # Pass 1: spatial mean per (batch, channel) tile -> (B, C, 1) f32.
    pooled = pl.pallas_call(
        functools.partial(_pool_kernel, inv_hw=float(1.0 / HW)),
        out_shape=jax.ShapeDtypeStruct((B, C, 1), jnp.float32),
        grid=grid,
        in_specs=[pl.BlockSpec((bt, ct, HW), lambda b, c: (b, c, 0))],
        out_specs=pl.BlockSpec((bt, ct, 1), lambda b, c: (b, c, 0)),
        compiler_params=pltpu.CompilerParams(
            dimension_semantics=sem, vmem_limit_bytes=vmem_limit),
        cost_estimate=pl.CostEstimate(
            flops=B * C * HW, transcendentals=0,
            bytes_accessed=B * C * HW * itemsize + B * C * 4),
    )(x)

    # Excitation on the tiny (B, C) pooled tensor: negligible work, keep in XLA.
    avg = pooled.reshape(B, C)
    h = jnp.maximum(
        jnp.dot(avg, w1t.astype(jnp.float32),
                preferred_element_type=jnp.float32) + b1, 0.0)
    gate = jax.nn.sigmoid(
        jnp.dot(h, w2t.astype(jnp.float32),
                preferred_element_type=jnp.float32) + b2)
    gate = gate.astype(jnp.float32).reshape(B, C, 1)

    # Pass 2: broadcast gate multiply.
    return pl.pallas_call(
        _scale_kernel,
        out_shape=jax.ShapeDtypeStruct((B, C, HW), dtype),
        grid=grid,
        in_specs=[pl.BlockSpec((bt, ct, HW), lambda b, c: (b, c, 0)),
                  pl.BlockSpec((bt, ct, 1), lambda b, c: (b, c, 0))],
        out_specs=pl.BlockSpec((bt, ct, HW), lambda b, c: (b, c, 0)),
        compiler_params=pltpu.CompilerParams(
            dimension_semantics=sem, vmem_limit_bytes=vmem_limit),
        cost_estimate=pl.CostEstimate(
            flops=B * C * HW, transcendentals=0,
            bytes_accessed=2 * B * C * HW * itemsize + B * C * 4),
    )(x, gate)


# ---------------------------------------------------------------------------
# Public entry point
# ---------------------------------------------------------------------------

def se_attn(x_nchw, w1t, b1, w2t, b2, *, force_two_pass=False):
    """SEAttn forward.

    x_nchw : (B, C, H, W)
    w1t    : (C, hidden)  == PyTorch fc[0].weight.T
    b1     : (1, hidden)  == fc[0].bias
    w2t    : (hidden, C)  == PyTorch fc[2].weight.T
    b2     : (1, C)       == fc[2].bias
    returns (B, C, H, W)
    """
    B, C, H, W = x_nchw.shape
    HW = H * W
    itemsize = jnp.dtype(x_nchw.dtype).itemsize

    # No pad / slice: (B, C, HW) with HW as a full-extent block dim.  A masked
    # tail store in the kernel beats two extra HBM passes of pad + slice.
    # TODO(synk): for late-stage SE shapes (C >= ~512, HW < 128) a (B, HW, C)
    # layout with C on the lane axis would be better still, but only if the
    # producer can hand over NHWC for free (a separate transpose pass here
    # would cancel the gain).
    x = x_nchw.reshape(B, C, HW)

    target_bytes, budget = _vmem_plan()
    row_bytes = C * HW * itemsize
    params_bytes = sum(int(a.size) * jnp.dtype(a.dtype).itemsize
                       for a in (w1t, b1, w2t, b2))
    fits_fused = 4 * row_bytes + params_bytes + _SLACK_BYTES <= budget

    if fits_fused and not force_two_pass:
        out = _se_fused(x, w1t, b1, w2t, b2, HW, target_bytes, budget)
    else:
        out = _se_two_pass(x, w1t, b1, w2t, b2, HW, target_bytes, budget)
    return out.reshape(B, C, H, W)


def se_attn_ref(x_nchw, w1t, b1, w2t, b2):
    """Plain-JAX reference mirroring the PyTorch forward."""
    avg = jnp.mean(x_nchw.astype(jnp.float32), axis=(2, 3))            # (B, C)
    h = jnp.maximum(avg @ w1t + b1, 0.0)                               # (B, hidden)
    gate = jax.nn.sigmoid(h @ w2t + b2)                                # (B, C)
    return (x_nchw.astype(jnp.float32)
            * gate[:, :, None, None]).astype(x_nchw.dtype)


if __name__ == "__main__":
    # Shapes consistent with the module: B=2, C=4, H=W=16, reduction=8
    # -> hidden = max(4 // 8, 2) = 2
    B, C, H, W = 2, 4, 16, 16
    reduction = 8
    hidden = max(C // reduction, 2)

    key = jax.random.PRNGKey(0)
    kx, k1, k2, k3, k4 = jax.random.split(key, 5)

    x = jax.random.normal(kx, (B, C, H, W), dtype=jnp.float32)
    # Deterministic synthetic parameters (PyTorch Linear shapes are (out, in));
    # stored pre-transposed for the kernel.
    w1t = jax.random.normal(k1, (C, hidden), dtype=jnp.float32) * 0.5   # fc[0].weight.T
    b1 = jax.random.normal(k2, (1, hidden), dtype=jnp.float32) * 0.1    # fc[0].bias
    w2t = jax.random.normal(k3, (hidden, C), dtype=jnp.float32) * 0.5   # fc[2].weight.T
    b2 = jax.random.normal(k4, (1, C), dtype=jnp.float32) * 0.1         # fc[2].bias

    ref = se_attn_ref(x, w1t, b1, w2t, b2)

    out = jax.block_until_ready(se_attn(x, w1t, b1, w2t, b2))
    assert out.shape == (B, C, H, W)
    assert jnp.allclose(out, ref, atol=1e-5, rtol=1e-5), "fused path mismatch"

    # Also exercise the two-pass (channel-tiled) fallback once so the
    # large-feature-map path is validated on-device as well.
    out2 = jax.block_until_ready(se_attn(x, w1t, b1, w2t, b2, force_two_pass=True))
    assert jnp.allclose(out2, ref, atol=1e-5, rtol=1e-5), "two-pass path mismatch"

    print("KERNEL_OK")
</pallas_src>

<mosaic_0001>
module attributes {stable_mosaic.version = 11 : i64} {
  func.func @_se_fused_kernel(%arg0: i32, %arg1: memref<1x4x256xf32, #tpu.memory_space<vmem>>, %arg2: memref<4x2xf32, #tpu.memory_space<vmem>>, %arg3: memref<1x2xf32, #tpu.memory_space<vmem>>, %arg4: memref<2x4xf32, #tpu.memory_space<vmem>>, %arg5: memref<1x4xf32, #tpu.memory_space<vmem>>, %arg6: memref<1x4x256xf32, #tpu.memory_space<vmem>>) attributes {dimension_semantics = [#tpu.dimension_semantics<parallel>], iteration_bounds = array<i64: 2>, scalar_prefetch = 0 : i64, scratch_operands = 0 : i64, tpu.core_type = #tpu.core_type<tc>, window_params = [{transform_indices = @transform_0, window_bounds = array<i64: 1, 4, 256>}, {pipeline_mode = #tpu.pipeline_mode<synchronous>, transform_indices = @transform_1, window_bounds = array<i64: 4, 2>}, {pipeline_mode = #tpu.pipeline_mode<synchronous>, transform_indices = @transform_2, window_bounds = array<i64: 1, 2>}, {pipeline_mode = #tpu.pipeline_mode<synchronous>, transform_indices = @transform_3, window_bounds = array<i64: 2, 4>}, {pipeline_mode = #tpu.pipeline_mode<synchronous>, transform_indices = @transform_4, window_bounds = array<i64: 1, 4>}, {transform_indices = @transform_5, window_bounds = array<i64: 1, 4, 256>}]} {
    %c0 = arith.constant 0 : index
    %c0_0 = arith.constant 0 : index
    %c0_1 = arith.constant 0 : index
    %0 = vector.load %arg1[%c0, %c0_0, %c0_1] : memref<1x4x256xf32, #tpu.memory_space<vmem>>, vector<1x4x256xf32>
    %cst = arith.constant dense<0.000000e+00> : vector<1x4xf32>
    %1 = vector.multi_reduction <add>, %0, %cst [2] : vector<1x4x256xf32> to vector<1x4xf32>
    %cst_2 = arith.constant 3.906250e-03 : f32
    %2 = vector.broadcast %cst_2 : f32 to vector<1x4xf32>
    %3 = arith.mulf %1, %2 : vector<1x4xf32>
    %c0_3 = arith.constant 0 : index
    %c0_4 = arith.constant 0 : index
    %4 = vector.load %arg2[%c0_3, %c0_4] : memref<4x2xf32, #tpu.memory_space<vmem>>, vector<4x2xf32>
    %cst_5 = arith.constant dense<0.000000e+00> : vector<1x2xf32>
    %5 = tpu.matmul %3, %4, %cst_5 {dimension_numbers = #tpu.dot_dimension_numbers<[1], [0], [0], [1], [0, 0, 1, 1], [], []>} : vector<1x4xf32>, vector<4x2xf32>, vector<1x2xf32> -> vector<1x2xf32>
    %c0_6 = arith.constant 0 : index
    %c0_7 = arith.constant 0 : index
    %6 = vector.load %arg3[%c0_6, %c0_7] : memref<1x2xf32, #tpu.memory_space<vmem>>, vector<1x2xf32>
    %7 = arith.addf %5, %6 : vector<1x2xf32>
    %cst_8 = arith.constant 0.000000e+00 : f32
    %8 = vector.broadcast %cst_8 : f32 to vector<1x2xf32>
    %9 = arith.maximumf %7, %8 : vector<1x2xf32>
    %c0_9 = arith.constant 0 : index
    %c0_10 = arith.constant 0 : index
    %10 = vector.load %arg4[%c0_9, %c0_10] : memref<2x4xf32, #tpu.memory_space<vmem>>, vector<2x4xf32>
    %cst_11 = arith.constant dense<0.000000e+00> : vector<1x4xf32>
    %11 = tpu.matmul %9, %10, %cst_11 {dimension_numbers = #tpu.dot_dimension_numbers<[1], [0], [0], [1], [0, 0, 1, 1], [], []>} : vector<1x2xf32>, vector<2x4xf32>, vector<1x4xf32> -> vector<1x4xf32>
    %c0_12 = arith.constant 0 : index
    %c0_13 = arith.constant 0 : index
    %12 = vector.load %arg5[%c0_12, %c0_13] : memref<1x4xf32, #tpu.memory_space<vmem>>, vector<1x4xf32>
    %13 = arith.addf %11, %12 : vector<1x4xf32>
    %cst_14 = arith.constant 5.000000e-01 : f32
    %14 = vector.broadcast %cst_14 : f32 to vector<1x4xf32>
    %15 = arith.mulf %14, %13 : vector<1x4xf32>
    %16 = math.tanh %15 : vector<1x4xf32>
    %cst_15 = arith.constant 5.000000e-01 : f32
    %17 = vector.broadcast %cst_15 : f32 to vector<1x4xf32>
    %18 = arith.mulf %17, %16 : vector<1x4xf32>
    %cst_16 = arith.constant 5.000000e-01 : f32
    %19 = vector.broadcast %cst_16 : f32 to vector<1x4xf32>
    %20 = arith.addf %18, %19 : vector<1x4xf32>
    %c0_17 = arith.constant 0 : index
    %c0_18 = arith.constant 0 : index
    %c0_19 = arith.constant 0 : index
    %21 = vector.load %arg1[%c0_17, %c0_18, %c0_19] : memref<1x4x256xf32, #tpu.memory_space<vmem>>, vector<1x4x256xf32>
    %22 = vector.shape_cast %20 : vector<1x4xf32> to vector<1x4x1xf32>
    %23 = vector.broadcast %22 : vector<1x4x1xf32> to vector<1x4x256xf32>
    %24 = arith.mulf %21, %23 : vector<1x4x256xf32>
    %c0_20 = arith.constant 0 : index
    %c0_21 = arith.constant 0 : index
    %c0_22 = arith.constant 0 : index
    %25 = vector.load %arg6[%c0_20, %c0_21, %c0_22] : memref<1x4x256xf32, #tpu.memory_space<vmem>>, vector<1x4x256xf32>
    tpu.vector_store %arg6[%c0_20, %c0_21, %c0_22], %24 {strides = array<i32>} : memref<1x4x256xf32, #tpu.memory_space<vmem>>, vector<1x4x256xf32>,
    return
  }
  func.func @transform_0(%arg0: i32) -> (i32, i32, i32) {
    %c0_i32 = arith.constant 0 : i32
    %c0_i32_0 = arith.constant 0 : i32
    %c0_i32_1 = arith.constant 0 : i32
    return %arg0, %c0_i32, %c0_i32_0 : i32, i32, i32
  }
  func.func @transform_1(%arg0: i32) -> (i32, i32) {
    %c0_i32 = arith.constant 0 : i32
    %c0_i32_0 = arith.constant 0 : i32
    %c0_i32_1 = arith.constant 0 : i32
    return %c0_i32, %c0_i32_0 : i32, i32
  }
  func.func @transform_2(%arg0: i32) -> (i32, i32) {
    %c0_i32 = arith.constant 0 : i32
    %c0_i32_0 = arith.constant 0 : i32
    %c0_i32_1 = arith.constant 0 : i32
    return %c0_i32, %c0_i32_0 : i32, i32
  }
  func.func @transform_3(%arg0: i32) -> (i32, i32) {
    %c0_i32 = arith.constant 0 : i32
    %c0_i32_0 = arith.constant 0 : i32
    %c0_i32_1 = arith.constant 0 : i32
    return %c0_i32, %c0_i32_0 : i32, i32
  }
  func.func @transform_4(%arg0: i32) -> (i32, i32) {
    %c0_i32 = arith.constant 0 : i32
    %c0_i32_0 = arith.constant 0 : i32
    %c0_i32_1 = arith.constant 0 : i32
    return %c0_i32, %c0_i32_0 : i32, i32
  }
  func.func @transform_5(%arg0: i32) -> (i32, i32, i32) {
    %c0_i32 = arith.constant 0 : i32
    %c0_i32_0 = arith.constant 0 : i32
    %c0_i32_1 = arith.constant 0 : i32
    return %arg0, %c0_i32, %c0_i32_0 : i32, i32, i32
  }
}

</mosaic_0001>

<bundles_post_ra>
// kernel: tpu_custom_call.1
= control target key start
LH: loop header
LB: loop body
LE: loop exit
PB: predicated region body
PF: predicated region fallthrough
CT: control target
= control target key end

     0   :  { %10 = vsyncpa [#allocation3], 0  ;;  %s921_s0 = inlined_call_operand.hbm [shape: f32[2,4,256], index: 0, kind: input, shape index: {}]   ;;  %s922_s1 = inlined_call_operand.vmem [shape: f32[4,2], index: 1, kind: input, shape index: {}]   ;;  %s923_s2 = inlined_call_operand.vmem [shape: f32[1,2], index: 2, kind: input, shape index: {}]   ;;  %s924_s3 = inlined_call_operand.vmem [shape: f32[2,4], index: 3, kind: input, shape index: {}]   ;;  %s925_s4 = inlined_call_operand.vmem [shape: f32[1,4], index: 4, kind: input, shape index: {}]   ;;  %s926_s5 = inlined_call_operand.hbm [shape: f32[2,4,256], index: 5, kind: output, shape index: {}]  }
   0x1   :  { %12 = vsyncpa [#allocation3 + $0x1], 0 }
   0x2   :  { %13 = vsyncpa [#allocation4], 0 }
   0x3   :  { %15 = vsyncpa [#allocation4 + $0x1], 0  ;;  %s744_s18 = smov 0   ;;  %s746_s19 = smov 0  }
   0x4   :  { %s748_s20 = smov 0   ;;  %s750_s21 = smov 0  }
   0x5 LB: > { %s765_s22 = sadd.s32 4294967295, %s707_s21   ;;  %s525_s23 = sadd.s32 4294967294, %s707_s21   ;;  %s707_s21 = sphi %s750_s21, %s941_s21   ;;  %s703_s20 = sphi %s748_s20, %s940_s20   ;;  %s699_s19 = sphi %s746_s19, %s939_s19   ;;  %s695_s18 = sphi %s744_s18, %s938_s18  }
   0x6   : > { %s769_s24 = sadd.s32 1, %s707_s21   ;;  %s28_s25 = sadd.s32 1, %s703_s20 }
   0x7   : > { %s25_s26 = ssub.s32 %s707_s21, %s769_s24  ;;  %p35_p0 = scmp.ne.s32.totalorder %s703_s20, %s699_s19 }
   0x8   : > { %p26_p1 = scmp.eq.s32.totalorder %s25_s26, 0  ;;  %p36_p2 = scmp.eq.s32.totalorder %s707_s21, 0 }
   0x9   : > { %p41_p3 = scmp.ne.s32.totalorder %s699_s19, %s695_s18  ;;  %p42_p4 = scmp.eq.s32.totalorder %s765_s22, 0 }
   0xa   : > { %s781_s27 = scalar_select %p26_p1, %s703_s20, %s28_s25  }
   0xb   : > { %p783_p5 = por %p36_p2, %p35_p0  ;;  %p787_p6 = por %p42_p4, %p41_p3 }
   0xc   : > { %p149_p7 = scmp.eq.s32.totalorder %s765_s22, 1  ;;  %p155_p8 = scmp.eq.s32.totalorder %s525_s23, 1 }
   0xd   : > { %p571_p10 = scmp.lt.s32.totalorder %s707_s21, 2  ;;  %s187_s7 = sand.u32 1, %s703_s20  }
   0xe   : > { %p794_p11 = por %p149_p7, %p35_p0  ;;  %p798_p12 = por %p155_p8, %p41_p3 }
   0xf   : > { %s543_s8 = sshll.u32 %s707_s21, 7  ;;  %s528_s9 = sshll.u32 %s187_s7, 3 }
  0x10   : > { %s930_s30 = scalar_select %p794_p11, 1, 0 }
  0x11   : > { %s931_s6 = scalar_select %p798_p12, 1, 0 }
  0x12   : > { %s807_s12 = scalar_lea.hbm %s921_s0, %s543_s8  ;;  %s191_s13 = scalar_lea.vmem [#allocation2], %s528_s9 }
  0x13   : > { %s199_s14 = sshll.u32 %s191_s13, 4  ;;  %p811_p13 = pnand %p571_p10, %p783_p5  ;;  %s815_s14 = int_to_ptr.vmem [resolvable:$true] %s199_s14 }
  0x14   : > { %s188_s16 = scalar_lea.sflag [#allocation3], %s187_s7  ;;  %s611_s17 = scalar_lea.hbm %s807_s12, 128 }
  0x15   : > { %p612_p2 = scmp.ne.s32.totalorder %s807_s12, %s611_s17  ;;  %p613_p3 = pneg %p811_p13 }
  0x16   : > { %s616_s26 = scalar_lea.hbm %s921_s0, 256  ;;  %p617_p5 = scmp.lt.u32.totalorder %s807_s12, %s921_s0 }
  0x17   : > { %p614_p4 = pnand %p613_p3, %p612_p2  ;;  %p618_p8 = scmp.lt.u32.totalorder %s616_s26, %s611_s17 }
  0x18   : > { %p620_p9 = scmp.lt.u32.totalorder %s611_s17, %s807_s12 }
  0x19   : > { %p615_p7 = pneg %p614_p4  ;;  %p619_p10 = por %p618_p8, %p617_p5 }
  0x1b   : > { %p621_p0 = por %p620_p9, %p619_p10 }
  0x1d   : > { %p622_p1 = pnand %p621_p0, %p615_p7 }
  0x1f   : > { %625 = shalt.err (!%p622_p1)
}
  0x20   : > { %s626_s7 = scalar_lea.vmem %s815_s14, 128  ;;  %s709_s9 = smov [#allocation2]  }
  0x21   : > { %p627_p2 = scmp.ne.s32.totalorder %s815_s14, %s626_s7  ;;  %s631_s10 = sshll.u32 %s709_s9, 4  ;;  %s632_s10 = int_to_ptr.vmem [resolvable:$false] %s631_s10 }
  0x22   : > { %s633_s11 = scalar_lea.vmem %s632_s10, 256  ;;  %p634_p11 = scmp.lt.s32.totalorder %s815_s14, %s632_s10 }
  0x23   : > { %p629_p4 = pnand %p627_p2, %p613_p3  ;;  %p635_p5 = scmp.lt.s32.totalorder %s633_s11, %s626_s7 }
  0x25   : > { %p630_p12 = pneg %p629_p4  ;;  %p636_p8 = por %p635_p5, %p634_p11 }
  0x27   : > { %p637_p9 = pnand %p636_p8, %p630_p12 }
  0x29   : > { %640 = shalt.err (!%p637_p9)
}
  0x2a   : > { %566 = dma.hbm_to_vmem [thread:$0]  (!%p811_p13), %s807_s12, 128, %s815_s14, %s188_s16  }
  0x2b   : > { %p933_p0 = scmp.lt.s32.totalorder %s707_s21, 3  ;;  %p934_p1 = scmp.ge.s32.totalorder %s707_s21, 1 }
  0x2d   : > { %p205_p3 = pnand %p934_p1, %p933_p0 }
  0x2e   : > { %s849_s13 = sand.u32 (!%p205_p3), 1, %s699_s19  }
  0x2f   : > { %208 = sbr.rel (%p205_p3) target bundleno = 789 (0x315), region = 40  ;;  %s532_s17 = sshll.u32 (!%p205_p3), %s849_s13, 3 }
  0x30   : > { %s211_s23 = scalar_lea.sflag (!%p205_p3), [#allocation3], %s849_s13  ;;  %s214_s15 = scalar_lea.vmem (!%p205_p3), [#allocation2], %s532_s17 }
  0x36   : > { %686 = dma.done.wait (%p787_p6), %s211_s23, 128  }
  0x37   : > { %688 = vsyncadd (%p787_p6), %s211_s23, 4294967168  ;;  %vm245_vm0 = vcmask 1043456   ;;  %v241_v0 = vld [vmem:[%s214_s15] sm:$0xff]  ;;  %v710_v5 = vmov 0.0   ;;  %vm711_vm1 = vmmov 0   ;;  %v255_v7 = vlaneseq  ;;  %s544_s7 = sshll.u32 %s765_s22, 7 }
  0x38   : > { %v243_v1 = vcombine.high %v241_v0, %v241_v0  ;;  %v246_v2 = vsel %vm245_vm0, %v241_v0, 0.0  ;;  %549 = vmatprep.subr.mxu0 %v710_v5  ;;  %v252_v6 = vld [vmem:[%s922_s1] sm:$0xf]  ;;  %554 = vmatprep.subr.mxu1 %v710_v5  ;;  %vm261_vm2 = vcmask 31744   ;;  %vm344_vm3 = vcmask 1041408   ;;  %s240_s9 = scalar_lea.vmem [#allocation5], %s532_s17  ;;  %s877_s15 = scalar_lea.hbm %s926_s5, %s544_s7 }
  0x39   : > { %550 = vmatpush3.msk.msra.mxu0 %vm245_vm0, %v252_v6  ;;  %551 = vmatprep.mubr.msk.f32.mxu0 %vm711_vm1, %v710_v5  ;;  %v256_v8 = vand.u32 127, %v255_v7  ;;  %v258_v9 = vshrl.u32 %v255_v7, 7  ;;  %v338_v14 = vld [vmem:[%s924_s3] sm:$0x3]  ;;  %vm340_vm4 = vcmask 15360   ;;  %s455_s10 = sshll.u32 %s240_s9, 4  ;;  %s879_s10 = int_to_ptr.vmem [resolvable:$true] %s455_s10 }
  0x3a   : > { %v247_v3 = vsel %vm245_vm0, %v243_v1, 0.0  ;;  %556 = vmatprep.mubr.msk.f32.mxu1 %vm711_vm1, %v710_v5  ;;  %555 = vmatpush3.msk.msra.mxu1 %vm344_vm3, %v338_v14  ;;  %v253_v15 = vld [vmem:[%s923_s2] sm:$0x1]  ;;  %v712_v30 = vmov 839922192   ;;  %s441_s12 = scalar_lea.sflag [#allocation4], %s849_s13 }
  0x3b   : > { %v248_v4 = vadd.f32 %v247_v3, %v246_v2  ;;  %v259_v10 = vsub.s32 %v256_v8, %v258_v9  ;;  %v339_v20 = vld [vmem:[%s925_s4] sm:$0x1]  ;;  %v424_v27 = vsub.s32 0, %v258_v9  ;;  %v431_v31 = vunpack.c.l.s4 %v712_v30  ;;  %s641_s14 = scalar_lea.vmem %s879_s10, 128  ;;  %p935_p11 = scmp.ne.s32.totalorder %s930_s30, 0 }
  0x3c   : > { %p642_p6 = scmp.ne.s32.totalorder %s879_s10, %s641_s14  ;;  %s713_s22 = smov [#allocation5]  }
  0x3d   : > { %249 = vadd.xlane.f32.xlu0 %v248_v4  ;;  %v432_v32 = vunpack.c.0.s8 %v431_v31  ;;  %s645_s17 = sshll.u32 %s713_s22, 4  ;;  %s646_s17 = int_to_ptr.vmem [resolvable:$false] %s645_s17 }
  0x3e   : > { %p643_p12 = pnand %p642_p6, %p935_p11  ;;  %s647_s29 = scalar_lea.vmem %s646_s17, 256 }
  0x3f   : > { %v435_v33 = vsub.s32 %v432_v32, %v258_v9  ;;  %p648_p7 = scmp.lt.s32.totalorder %s879_s10, %s646_s17  ;;  %p649_p10 = scmp.lt.s32.totalorder %s647_s29, %s641_s14 }
  0x40   : > { %p644_p13 = pneg %p643_p12 }
  0x41   : > { %p650_p2 = por %p649_p10, %p648_p7 }
  0x43   : > { %p651_p4 = pnand %p650_p2, %p644_p13 }
  0xca   : > { %v250_v11 = vpop.xlane.xlu0 %249 }
  0xcb   : > { %v251_v12 = vmul.f32 0.00390625, %v250_v11 }
  0xcd   : > { %v260_v13 = vrot.slane %v251_v12, %v259_v10 }
  0xcf   : > { %552 = vmatmul.mubr.msk.f32.vlgmr.msra.gmra.mrb[0].mxu0 %vm261_vm2, %v260_v13 }
 0x1a2   : > { %v333_v16 = vpop.f32.mrb[0].mxu0 }
 0x1a3   : > { %v334_v17 = vadd.f32 %v333_v16, %v253_v15  ;;  %v553_v18 = vpop.f32.mrb[1].mxu0 }
 0x1a5   : > { %v337_v19 = vmax.f32 %v334_v17, 0.0 }
 0x1a7   : > { %557 = vmatmul.mubr.msk.f32.vlgmr.msra.gmra.mrb[0].mxu1 %vm340_vm4, %v337_v19 }
 0x27a   : > { %v414_v21 = vpop.f32.mrb[0].mxu1 }
 0x27b   : > { %v415_v22 = vadd.f32 %v414_v21, %v339_v20  ;;  %v558_v23 = vpop.f32.mrb[1].mxu1 }
 0x27d   : > { %v418_v24 = vmul.f32 0.5, %v415_v22 }
 0x27f   : > { %609 = vtanh.f32 %v418_v24 }
 0x289   : > { %v610_v25 = vpop.eup %609 }
 0x28a   : > { %v420_v26 = vmul.f32 0.5, %v610_v25 }
 0x28c   : > { %v421_v28 = vadd.f32 0.5, %v420_v26 }
 0x28e   : > { %v425_v29 = vrot.slane %v421_v28, %v424_v27 }
 0x290   : > { %427 = vbcast.lane.b32.xlu0 %v425_v29, 256 }
 0x302   : > { %v428_v34 = vpop.permute.xlu0 %427 }
 0x303   : > { %v436_v35 = vrot.slane %v428_v34, %v435_v33 }
 0x305   : > { %v438_v36 = vmul.f32 %v436_v35, %v241_v0 }
 0x307   : > { %439 = vst [vmem:[%s240_s9] sm:$0xff] %v438_v36 }
 0x308   : > { %654 = shalt.err (!%p651_p4)
}
 0x309   : > { %s655_s13 = scalar_lea.hbm %s877_s15, 128  ;;  %s659_s26 = scalar_lea.hbm %s926_s5, 256 }
 0x30a   : > { %p656_p5 = scmp.ne.s32.totalorder %s877_s15, %s655_s13  ;;  %p660_p0 = scmp.lt.u32.totalorder %s877_s15, %s926_s5 }
 0x30b   : > { %p661_p1 = scmp.lt.u32.totalorder %s659_s26, %s655_s13  ;;  %p663_p6 = scmp.lt.u32.totalorder %s655_s13, %s877_s15 }
 0x30c   : > { %p657_p8 = pnand %p656_p5, %p935_p11 }
 0x30d   : > { %p662_p3 = por %p661_p1, %p660_p0 }
 0x30e   : > { %p658_p9 = pneg %p657_p8 }
 0x30f   : > { %p664_p12 = por %p663_p6, %p662_p3 }
 0x311   : > { %p665_p13 = pnand %p664_p12, %p658_p9 }
 0x313   : > { %668 = shalt.err (!%p665_p13)
}
 0x314   : > { %561 = dma.vmem_to_hbm [thread:$0]  (%p935_p11), %s879_s10, 128, %s877_s15, %s441_s12  }
 0x315 PF: > { %s467_s7 = sand.u32 1, %s695_s18   ;;  %p936_p7 = scmp.ne.s32.totalorder %s931_s6, 0 }
 0x316   : > { %p937_p10 = scmp.ge.s32.totalorder %s707_s21, 2  ;;  %s468_s9 = scalar_lea.sflag [#allocation4], %s467_s7 }
 0x318   : > { %p568_p2 = pnand %p937_p10, %p936_p7 }
 0x31a   : > { %690 = dma.done.wait (!%p568_p2), %s468_s9, 128  }
 0x31b   : > { %692 = vsyncadd (!%p568_p2), %s468_s9, 4294967168  ;;  %p18_p4 = scmp.ge.s32.totalorder %s769_s24, 4   ;;  %s938_s18 = smov %s699_s19 }
 0x31c   : > { %s939_s19 = smov %s703_s20  ;;  %s940_s20 = smov %s781_s27 }
 0x31d   : > { %s941_s21 = smov %s769_s24  ;;  %20 = sbr.rel (!%p18_p4) target bundleno = 5 (0x5), region = 85 }
 0x324   :  { %473 = vsyncpa [#allocation3], 1 }
 0x325   :  { %475 = vsyncpa [#allocation3 + $0x1], 1 }
 0x326   :  { %476 = vsyncpa [#allocation4], 1 }
 0x327   :  { %478 = vsyncpa [#allocation4 + $0x1], 1 }

</bundles_post_ra>
